<compile_context>
chip_gen: v7x
topology: tpu7x:2x2x1
jax: 0.10.0
libtpu: 0.0.40
codegen_flags: <defaults>
</compile_context>

<pallas_src>
import functools

import jax
import jax.numpy as jnp
from jax.experimental import pallas as pl
from jax.experimental.pallas import tpu as pltpu

# ---- model hyperparameters (args.*) ----
N_CLASSES = 8
LATENT_DIM = 16
H1, H2, OUT = 64, 32, 16
BN_EPS = 0.8
LRELU_SLOPE = 0.2


def _leaky_relu(x):
    return jnp.where(x >= 0.0, x, LRELU_SLOPE * x)


def _h2_from_inputs(labels_ref, z_ref, w1e_ref, w1z_ref, b1_ref, w2_ref, b2_ref):
    """Fused one-hot embedding + layer 1 (LeakyReLU) + layer 2 pre-BN activations."""
    tb = z_ref.shape[0]
    labels = labels_ref[...]                                         # [tb, 1] int32
    class_ids = jax.lax.broadcasted_iota(jnp.int32, (tb, N_CLASSES), 1)
    onehot = (labels == class_ids).astype(jnp.float32)               # [tb, 8]
    # Embedding table already folded into w1e_ref (= emb_table @ w1_emb):
    # a single [tb,8]@[8,64] MXU push instead of gather + extra matmul.
    h1 = (jnp.dot(onehot, w1e_ref[...], preferred_element_type=jnp.float32)
          + jnp.dot(z_ref[...], w1z_ref[...], preferred_element_type=jnp.float32)
          + b1_ref[...])
    h1 = _leaky_relu(h1)
    return jnp.dot(h1, w2_ref[...], preferred_element_type=jnp.float32) + b2_ref[...]


def _masked_stats(h2, row_offset, real_batch):
    """[1, 2*H2] row: [sum(h2), sum(h2^2)] over real (non-padded) batch rows."""
    tb = h2.shape[0]
    rows = jax.lax.broadcasted_iota(jnp.int32, (1, tb), 1) + row_offset
    mask = (rows < real_batch).astype(jnp.float32)                   # [1, tb]
    # Both moments in one MXU push; the lane-axis concat rides the idle XLU slot.
    stacked = jnp.concatenate([h2, h2 * h2], axis=1)                 # [tb, 2*H2]
    return jnp.dot(mask, stacked, preferred_element_type=jnp.float32)


def _bn_act_out(h2, stats, gamma, beta, w3, b3, inv_batch):
    """Folded BatchNorm (training-mode batch stats) + LeakyReLU + layer 3 + sigmoid."""
    mean = stats[:, :H2] * inv_batch
    # E[x^2]-mean^2 in f32; BN_EPS=0.8 and the clamp keep this well-conditioned here.
    var = jnp.maximum(stats[:, H2:] * inv_batch - mean * mean, 0.0)
    scale = gamma * jax.lax.rsqrt(var + BN_EPS)
    shift = beta - mean * scale
    h2n = _leaky_relu(h2 * scale + shift)
    h3 = jnp.dot(h2n, w3, preferred_element_type=jnp.float32) + b3
    # Exact sigmoid (approx reciprocal would loosen the f32 match vs. PyTorch).
    return 1.0 / (1.0 + jnp.exp(-h3))


def _generator_single_pass_kernel(labels_ref, z_ref, w1e_ref, w1z_ref, b1_ref,
                                  w2_ref, b2_ref, gamma_ref, beta_ref,
                                  w3_ref, b3_ref, out_ref,
                                  *, inv_batch, real_batch):
    """Whole (padded) batch in one tile: compute h2 once, stats + output in-place."""
    h2 = _h2_from_inputs(labels_ref, z_ref, w1e_ref, w1z_ref, b1_ref,
                         w2_ref, b2_ref)
    stats = _masked_stats(h2, 0, real_batch)
    out_ref[...] = _bn_act_out(h2, stats, gamma_ref[...], beta_ref[...],
                               w3_ref[...], b3_ref[...],
                               inv_batch).astype(out_ref.dtype)


def _generator_two_pass_kernel(labels_ref, z_ref, w1e_ref, w1z_ref, b1_ref,
                               w2_ref, b2_ref, gamma_ref, beta_ref,
                               w3_ref, b3_ref, out_ref,
                               stats_ref, h2_cache_ref,
                               *, inv_batch, real_batch, cache_h2):
    """Multi-tile batch: pass 0 accumulates full-batch BN stats, pass 1 outputs."""
    p = pl.program_id(0)   # 0 = statistics pass, 1 = normalize/output pass
    t = pl.program_id(1)   # batch-tile index
    tb = z_ref.shape[0]

    @pl.when(jnp.logical_and(p == 0, t == 0))
    def _init_stats():
        stats_ref[...] = jnp.zeros_like(stats_ref)

    @pl.when(p == 0)
    def _stats_pass():
        h2 = _h2_from_inputs(labels_ref, z_ref, w1e_ref, w1z_ref, b1_ref,
                             w2_ref, b2_ref)
        if cache_h2:
            h2_cache_ref[t] = h2          # stash pre-BN activations for pass 1
        stats_ref[...] += _masked_stats(h2, t * tb, real_batch)

    @pl.when(p == 1)
    def _output_pass():
        if cache_h2:
            h2 = h2_cache_ref[t]          # no recompute, no z/labels re-read
        else:
            h2 = _h2_from_inputs(labels_ref, z_ref, w1e_ref, w1z_ref, b1_ref,
                                 w2_ref, b2_ref)
        out_ref[...] = _bn_act_out(h2, stats_ref[...], gamma_ref[...],
                                   beta_ref[...], w3_ref[...], b3_ref[...],
                                   inv_batch).astype(out_ref.dtype)


def _round_up(x, m):
    return ((x + m - 1) // m) * m


@functools.partial(jax.jit,
                   static_argnames=("max_batch_tile", "h2_cache_budget_bytes"))
def generator_forward(z, gen_labels, params, *,
                      max_batch_tile=4096,
                      h2_cache_budget_bytes=24 * 1024 * 1024):
    """z: [B, latent_dim] f32, gen_labels: [B] int -> [B, 16] f32."""
    batch = z.shape[0]
    # Fat, padded batch tiles: per-grid-step overhead dominates the
    # sub-microsecond per-tile work, so amortize with large tiles and pad the
    # batch instead of shrinking the tile to a divisor of B.
    tb = min(_round_up(max_batch_tile, 8), _round_up(batch, 8))
    padded = _round_up(batch, tb)
    nt = padded // tb

    labels = gen_labels.astype(jnp.int32)
    if padded != batch:
        z_in = jnp.pad(z, ((0, padded - batch), (0, 0)))
        labels = jnp.pad(labels, (0, padded - batch))
    else:
        z_in = z
    labels2d = labels.reshape(padded, 1)

    # Fold the embedding table into layer 1 (tiny [8,8]@[8,64] outside the kernel).
    w1e_eff = jnp.dot(params["emb_table"], params["w1_emb"])

    weight_args = (w1e_eff, params["w1_z"], params["b1"],
                   params["w2"], params["b2"], params["gamma"], params["beta"],
                   params["w3"], params["b3"])
    weight_shapes = [(N_CLASSES, H1), (LATENT_DIM, H1), (1, H1),
                     (H1, H2), (1, H2), (1, H2), (1, H2),
                     (H2, OUT), (1, OUT)]

    inv_batch = 1.0 / batch

    if nt == 1:
        # ---- single-tile fast path (typical GAN batch sizes) ----
        const1 = lambda i: (0, 0)
        in_specs = ([pl.BlockSpec((tb, 1), const1),
                     pl.BlockSpec((tb, LATENT_DIM), const1)]
                    + [pl.BlockSpec(s, const1) for s in weight_shapes])
        out = pl.pallas_call(
            functools.partial(_generator_single_pass_kernel,
                              inv_batch=inv_batch, real_batch=batch),
            out_shape=jax.ShapeDtypeStruct((padded, OUT), jnp.float32),
            grid=(1,),
            in_specs=in_specs,
            out_specs=pl.BlockSpec((tb, OUT), const1),
            compiler_params=pltpu.CompilerParams(
                dimension_semantics=("arbitrary",),
                vmem_limit_bytes=48 * 1024 * 1024),
        )(labels2d, z_in, *weight_args)
    else:
        # ---- multi-tile two-pass path (full-batch BatchNorm statistics) ----
        # VMEM footprint of the h2 cache counts lane padding (H2=32 -> 128 lanes).
        cache_vmem_bytes = nt * tb * 128 * 4
        cache_h2 = cache_vmem_bytes <= h2_cache_budget_bytes

        if cache_h2:
            h2_scratch = pltpu.VMEM((nt, tb, H2), jnp.float32)
            # Pass 0 streams batch tiles; pass 1 stays parked on the last tile
            # so z / labels are never DMA'd from HBM a second time.
            batch_map = lambda p, t: (t * (1 - p) + (nt - 1) * p, 0)
            vmem_limit = min(cache_vmem_bytes + 24 * 1024 * 1024,
                             56 * 1024 * 1024)
        else:
            h2_scratch = pltpu.VMEM((1, 8, 128), jnp.float32)   # unused dummy
            batch_map = lambda p, t: (t, 0)                     # recompute path
            vmem_limit = 32 * 1024 * 1024
        const2 = lambda p, t: (0, 0)

        in_specs = ([pl.BlockSpec((tb, 1), batch_map),
                     pl.BlockSpec((tb, LATENT_DIM), batch_map)]
                    + [pl.BlockSpec(s, const2) for s in weight_shapes])

        # Output block index is parked at 0 during the stats pass (nothing is
        # written there) and mapped 1:1 to batch tiles during pass 1.  This is
        # only correct because the grid is sequential: block 0 is filled at
        # (p=1, t=0) before any write-back occurs.  Do NOT flip either axis to
        # "parallel" -- the BN statistics couple every tile.
        out_specs = pl.BlockSpec((tb, OUT), lambda p, t: (t * p, 0))

        out = pl.pallas_call(
            functools.partial(_generator_two_pass_kernel,
                              inv_batch=inv_batch, real_batch=batch,
                              cache_h2=cache_h2),
            out_shape=jax.ShapeDtypeStruct((padded, OUT), jnp.float32),
            grid=(2, nt),
            in_specs=in_specs,
            out_specs=out_specs,
            scratch_shapes=[pltpu.VMEM((1, 2 * H2), jnp.float32),  # [sum, sumsq]
                            h2_scratch],
            compiler_params=pltpu.CompilerParams(
                dimension_semantics=("arbitrary", "arbitrary"),
                vmem_limit_bytes=vmem_limit),
        )(labels2d, z_in, *weight_args)

    return out[:batch] if padded != batch else out


def init_params(key):
    ks = jax.random.split(key, 8)
    in_feat = LATENT_DIM + N_CLASSES

    def linear_init(kw, kb, fan_in, fan_out):
        # PyTorch nn.Linear default: U(-1/sqrt(fan_in), 1/sqrt(fan_in))
        bound = 1.0 / jnp.sqrt(fan_in)
        w = jax.random.uniform(kw, (fan_in, fan_out), jnp.float32, -bound, bound)
        b = jax.random.uniform(kb, (1, fan_out), jnp.float32, -bound, bound)
        return w, b

    w1, b1 = linear_init(ks[0], ks[1], in_feat, H1)
    w2, b2 = linear_init(ks[2], ks[3], H1, H2)
    w3, b3 = linear_init(ks[4], ks[5], H2, OUT)
    emb_table = jax.random.normal(ks[6], (N_CLASSES, N_CLASSES), jnp.float32)
    return {
        "emb_table": emb_table,
        "w1_emb": w1[:N_CLASSES], "w1_z": w1[N_CLASSES:], "b1": b1,
        "w2": w2, "b2": b2,
        "gamma": jnp.ones((1, H2), jnp.float32),
        "beta": jnp.zeros((1, H2), jnp.float32),
        "w3": w3, "b3": b3,
    }


def reference_forward(z, gen_labels, params):
    """Pure-JAX reference mirroring the PyTorch forward (training-mode BN)."""
    emb = params["emb_table"][gen_labels]
    x = jnp.concatenate([emb, z], axis=-1)
    w1 = jnp.concatenate([params["w1_emb"], params["w1_z"]], axis=0)
    h1 = x @ w1 + params["b1"]
    h1 = jnp.where(h1 >= 0, h1, LRELU_SLOPE * h1)
    h2 = h1 @ params["w2"] + params["b2"]
    mean = h2.mean(axis=0, keepdims=True)
    var = ((h2 - mean) ** 2).mean(axis=0, keepdims=True)   # biased variance
    h2 = (h2 - mean) / jnp.sqrt(var + BN_EPS) * params["gamma"] + params["beta"]
    h2 = jnp.where(h2 >= 0, h2, LRELU_SLOPE * h2)
    h3 = h2 @ params["w3"] + params["b3"]
    return jax.nn.sigmoid(h3)


if __name__ == "__main__":
    key = jax.random.PRNGKey(0)
    k_params, k_z, k_lbl, k_z2, k_lbl2, k_z3, k_lbl3 = jax.random.split(key, 7)

    params = init_params(k_params)

    # 1) Single-tile fast path, batch an exact multiple of 8.
    batch = 8
    z = jax.random.normal(k_z, (batch, LATENT_DIM), jnp.float32)
    gen_labels = jax.random.randint(k_lbl, (batch,), 0, N_CLASSES, jnp.int32)
    out = jax.block_until_ready(generator_forward(z, gen_labels, params))
    ref = reference_forward(z, gen_labels, params)
    assert out.shape == (batch, OUT)
    assert jnp.allclose(out, ref, atol=2e-5, rtol=2e-5), "mismatch (B=8, 1 tile)"

    # 2) Single-tile path with padding (batch not a multiple of 8).
    batch2 = 20
    z2 = jax.random.normal(k_z2, (batch2, LATENT_DIM), jnp.float32)
    labels2 = jax.random.randint(k_lbl2, (batch2,), 0, N_CLASSES, jnp.int32)
    out2 = jax.block_until_ready(generator_forward(z2, labels2, params))
    ref2 = reference_forward(z2, labels2, params)
    assert out2.shape == (batch2, OUT)
    assert jnp.allclose(out2, ref2, atol=2e-5, rtol=2e-5), "mismatch (B=20, padded)"

    # 3) Multi-tile two-pass path with the VMEM h2 cache (padded + masked stats).
    batch3 = 40
    z3 = jax.random.normal(k_z3, (batch3, LATENT_DIM), jnp.float32)
    labels3 = jax.random.randint(k_lbl3, (batch3,), 0, N_CLASSES, jnp.int32)
    out3 = jax.block_until_ready(
        generator_forward(z3, labels3, params, max_batch_tile=16))
    ref3 = reference_forward(z3, labels3, params)
    assert jnp.allclose(out3, ref3, atol=2e-5, rtol=2e-5), "mismatch (B=40, cached)"

    # 4) Multi-tile two-pass path with the cache disabled (recompute fallback).
    out4 = jax.block_until_ready(
        generator_forward(z3, labels3, params, max_batch_tile=16,
                          h2_cache_budget_bytes=0))
    assert jnp.allclose(out4, ref3, atol=2e-5, rtol=2e-5), "mismatch (B=40, recompute)"

    print("KERNEL_OK")
</pallas_src>

<mosaic_0001>
module attributes {stable_mosaic.version = 11 : i64} {
  func.func @_generator_single_pass_kernel(%arg0: i32, %arg1: memref<8x1xi32, #tpu.memory_space<vmem>>, %arg2: memref<8x16xf32, #tpu.memory_space<vmem>>, %arg3: memref<8x64xf32, #tpu.memory_space<vmem>>, %arg4: memref<16x64xf32, #tpu.memory_space<vmem>>, %arg5: memref<1x64xf32, #tpu.memory_space<vmem>>, %arg6: memref<64x32xf32, #tpu.memory_space<vmem>>, %arg7: memref<1x32xf32, #tpu.memory_space<vmem>>, %arg8: memref<1x32xf32, #tpu.memory_space<vmem>>, %arg9: memref<1x32xf32, #tpu.memory_space<vmem>>, %arg10: memref<32x16xf32, #tpu.memory_space<vmem>>, %arg11: memref<1x16xf32, #tpu.memory_space<vmem>>, %arg12: memref<8x16xf32, #tpu.memory_space<vmem>>) attributes {dimension_semantics = [#tpu.dimension_semantics<arbitrary>], iteration_bounds = array<i64: 1>, scalar_prefetch = 0 : i64, scratch_operands = 0 : i64, tpu.core_type = #tpu.core_type<tc>, window_params = [{pipeline_mode = #tpu.pipeline_mode<synchronous>, transform_indices = @transform_0, window_bounds = array<i64: 8, 1>}, {pipeline_mode = #tpu.pipeline_mode<synchronous>, transform_indices = @transform_1, window_bounds = array<i64: 8, 16>}, {pipeline_mode = #tpu.pipeline_mode<synchronous>, transform_indices = @transform_2, window_bounds = array<i64: 8, 64>}, {pipeline_mode = #tpu.pipeline_mode<synchronous>, transform_indices = @transform_3, window_bounds = array<i64: 16, 64>}, {pipeline_mode = #tpu.pipeline_mode<synchronous>, transform_indices = @transform_4, window_bounds = array<i64: 1, 64>}, {pipeline_mode = #tpu.pipeline_mode<synchronous>, transform_indices = @transform_5, window_bounds = array<i64: 64, 32>}, {pipeline_mode = #tpu.pipeline_mode<synchronous>, transform_indices = @transform_6, window_bounds = array<i64: 1, 32>}, {pipeline_mode = #tpu.pipeline_mode<synchronous>, transform_indices = @transform_7, window_bounds = array<i64: 1, 32>}, {pipeline_mode = #tpu.pipeline_mode<synchronous>, transform_indices = @transform_8, window_bounds = array<i64: 1, 32>}, {pipeline_mode = #tpu.pipeline_mode<synchronous>, transform_indices = @transform_9, window_bounds = array<i64: 32, 16>}, {pipeline_mode = #tpu.pipeline_mode<synchronous>, transform_indices = @transform_10, window_bounds = array<i64: 1, 16>}, {pipeline_mode = #tpu.pipeline_mode<synchronous>, transform_indices = @transform_11, window_bounds = array<i64: 8, 16>}]} {
    %c0 = arith.constant 0 : index
    %c0_0 = arith.constant 0 : index
    %0 = vector.load %arg1[%c0, %c0_0] : memref<8x1xi32, #tpu.memory_space<vmem>>, vector<8x1xi32>
    %1 = tpu.iota {dimensions = array<i32: 1>} : vector<8x8xi32>
    %2 = vector.broadcast %0 : vector<8x1xi32> to vector<8x8xi32>
    %3 = arith.cmpi eq, %2, %1 : vector<8x8xi32>
    %4 = arith.extui %3 : vector<8x8xi1> to vector<8x8xi32>
    %5 = arith.sitofp %4 : vector<8x8xi32> to vector<8x8xf32>
    %c0_1 = arith.constant 0 : index
    %c0_2 = arith.constant 0 : index
    %6 = vector.load %arg3[%c0_1, %c0_2] : memref<8x64xf32, #tpu.memory_space<vmem>>, vector<8x64xf32>
    %cst = arith.constant dense<0.000000e+00> : vector<8x64xf32>
    %7 = tpu.matmul %5, %6, %cst {dimension_numbers = #tpu.dot_dimension_numbers<[1], [0], [0], [1], [0, 0, 1, 1], [], []>} : vector<8x8xf32>, vector<8x64xf32>, vector<8x64xf32> -> vector<8x64xf32>
    %c0_3 = arith.constant 0 : index
    %c0_4 = arith.constant 0 : index
    %8 = vector.load %arg2[%c0_3, %c0_4] : memref<8x16xf32, #tpu.memory_space<vmem>>, vector<8x16xf32>
    %c0_5 = arith.constant 0 : index
    %c0_6 = arith.constant 0 : index
    %9 = vector.load %arg4[%c0_5, %c0_6] : memref<16x64xf32, #tpu.memory_space<vmem>>, vector<16x64xf32>
    %cst_7 = arith.constant dense<0.000000e+00> : vector<8x64xf32>
    %10 = tpu.matmul %8, %9, %cst_7 {dimension_numbers = #tpu.dot_dimension_numbers<[1], [0], [0], [1], [0, 0, 1, 1], [], []>} : vector<8x16xf32>, vector<16x64xf32>, vector<8x64xf32> -> vector<8x64xf32>
    %11 = arith.addf %7, %10 : vector<8x64xf32>
    %c0_8 = arith.constant 0 : index
    %c0_9 = arith.constant 0 : index
    %12 = vector.load %arg5[%c0_8, %c0_9] : memref<1x64xf32, #tpu.memory_space<vmem>>, vector<1x64xf32>
    %13 = vector.broadcast %12 : vector<1x64xf32> to vector<8x64xf32>
    %14 = arith.addf %11, %13 : vector<8x64xf32>
    %cst_10 = arith.constant 0.000000e+00 : f32
    %15 = vector.broadcast %cst_10 : f32 to vector<8x64xf32>
    %16 = arith.cmpf oge, %14, %15 : vector<8x64xf32>
    %cst_11 = arith.constant 2.000000e-01 : f32
    %17 = vector.broadcast %cst_11 : f32 to vector<8x64xf32>
    %18 = arith.mulf %17, %14 : vector<8x64xf32>
    %19 = arith.select %16, %14, %18 : vector<8x64xi1>, vector<8x64xf32>
    %c0_12 = arith.constant 0 : index
    %c0_13 = arith.constant 0 : index
    %20 = vector.load %arg6[%c0_12, %c0_13] : memref<64x32xf32, #tpu.memory_space<vmem>>, vector<64x32xf32>
    %cst_14 = arith.constant dense<0.000000e+00> : vector<8x32xf32>
    %21 = tpu.matmul %19, %20, %cst_14 {dimension_numbers = #tpu.dot_dimension_numbers<[1], [0], [0], [1], [0, 0, 1, 1], [], []>} : vector<8x64xf32>, vector<64x32xf32>, vector<8x32xf32> -> vector<8x32xf32>
    %c0_15 = arith.constant 0 : index
    %c0_16 = arith.constant 0 : index
    %22 = vector.load %arg7[%c0_15, %c0_16] : memref<1x32xf32, #tpu.memory_space<vmem>>, vector<1x32xf32>
    %23 = vector.broadcast %22 : vector<1x32xf32> to vector<8x32xf32>
    %24 = arith.addf %21, %23 : vector<8x32xf32>
    %25 = tpu.iota {dimensions = array<i32: 1>} : vector<1x8xi32>
    %c0_i32 = arith.constant 0 : i32
    %26 = vector.broadcast %c0_i32 : i32 to vector<1x8xi32>
    %27 = arith.addi %25, %26 : vector<1x8xi32>
    %c8_i32 = arith.constant 8 : i32
    %28 = vector.broadcast %c8_i32 : i32 to vector<1x8xi32>
    %29 = arith.cmpi slt, %27, %28 : vector<1x8xi32>
    %30 = arith.extui %29 : vector<1x8xi1> to vector<1x8xi32>
    %31 = arith.sitofp %30 : vector<1x8xi32> to vector<1x8xf32>
    %32 = arith.mulf %24, %24 : vector<8x32xf32>
    %33 = tpu.concatenate %24, %32 in 1 : vector<8x32xf32>, vector<8x32xf32> -> vector<8x64xf32>
    %cst_17 = arith.constant dense<0.000000e+00> : vector<1x64xf32>
    %34 = tpu.matmul %31, %33, %cst_17 {dimension_numbers = #tpu.dot_dimension_numbers<[1], [0], [0], [1], [0, 0, 1, 1], [], []>} : vector<1x8xf32>, vector<8x64xf32>, vector<1x64xf32> -> vector<1x64xf32>
    %c0_18 = arith.constant 0 : index
    %c0_19 = arith.constant 0 : index
    %35 = vector.load %arg8[%c0_18, %c0_19] : memref<1x32xf32, #tpu.memory_space<vmem>>, vector<1x32xf32>
    %c0_20 = arith.constant 0 : index
    %c0_21 = arith.constant 0 : index
    %36 = vector.load %arg9[%c0_20, %c0_21] : memref<1x32xf32, #tpu.memory_space<vmem>>, vector<1x32xf32>
    %c0_22 = arith.constant 0 : index
    %c0_23 = arith.constant 0 : index
    %37 = vector.load %arg10[%c0_22, %c0_23] : memref<32x16xf32, #tpu.memory_space<vmem>>, vector<32x16xf32>
    %c0_24 = arith.constant 0 : index
    %c0_25 = arith.constant 0 : index
    %38 = vector.load %arg11[%c0_24, %c0_25] : memref<1x16xf32, #tpu.memory_space<vmem>>, vector<1x16xf32>
    %39 = vector.extract_strided_slice %34 {offsets = [0, 0], sizes = [1, 32], strides = [1, 1]} : vector<1x64xf32> to vector<1x32xf32>
    %cst_26 = arith.constant 1.250000e-01 : f32
    %40 = vector.broadcast %cst_26 : f32 to vector<1x32xf32>
    %41 = arith.mulf %39, %40 : vector<1x32xf32>
    %42 = vector.extract_strided_slice %34 {offsets = [0, 32], sizes = [1, 32], strides = [1, 1]} : vector<1x64xf32> to vector<1x32xf32>
    %cst_27 = arith.constant 1.250000e-01 : f32
    %43 = vector.broadcast %cst_27 : f32 to vector<1x32xf32>
    %44 = arith.mulf %42, %43 : vector<1x32xf32>
    %45 = arith.mulf %41, %41 : vector<1x32xf32>
    %46 = arith.subf %44, %45 : vector<1x32xf32>
    %cst_28 = arith.constant 0.000000e+00 : f32
    %47 = vector.broadcast %cst_28 : f32 to vector<1x32xf32>
    %48 = arith.maximumf %46, %47 : vector<1x32xf32>
    %cst_29 = arith.constant 8.000000e-01 : f32
    %49 = vector.broadcast %cst_29 : f32 to vector<1x32xf32>
    %50 = arith.addf %48, %49 : vector<1x32xf32>
    %51 = math.rsqrt %50 : vector<1x32xf32>
    %52 = arith.mulf %35, %51 : vector<1x32xf32>
    %53 = arith.mulf %41, %52 : vector<1x32xf32>
    %54 = arith.subf %36, %53 : vector<1x32xf32>
    %55 = vector.broadcast %52 : vector<1x32xf32> to vector<8x32xf32>
    %56 = arith.mulf %24, %55 : vector<8x32xf32>
    %57 = vector.broadcast %54 : vector<1x32xf32> to vector<8x32xf32>
    %58 = arith.addf %56, %57 : vector<8x32xf32>
    %cst_30 = arith.constant 0.000000e+00 : f32
    %59 = vector.broadcast %cst_30 : f32 to vector<8x32xf32>
    %60 = arith.cmpf oge, %58, %59 : vector<8x32xf32>
    %cst_31 = arith.constant 2.000000e-01 : f32
    %61 = vector.broadcast %cst_31 : f32 to vector<8x32xf32>
    %62 = arith.mulf %61, %58 : vector<8x32xf32>
    %63 = arith.select %60, %58, %62 : vector<8x32xi1>, vector<8x32xf32>
    %cst_32 = arith.constant dense<0.000000e+00> : vector<8x16xf32>
    %64 = tpu.matmul %63, %37, %cst_32 {dimension_numbers = #tpu.dot_dimension_numbers<[1], [0], [0], [1], [0, 0, 1, 1], [], []>} : vector<8x32xf32>, vector<32x16xf32>, vector<8x16xf32> -> vector<8x16xf32>
    %65 = vector.broadcast %38 : vector<1x16xf32> to vector<8x16xf32>
    %66 = arith.addf %64, %65 : vector<8x16xf32>
    %cst_33 = arith.constant 0.000000e+00 : f32
    %67 = vector.broadcast %cst_33 : f32 to vector<8x16xf32>
    %68 = arith.subf %67, %66 : vector<8x16xf32>
    %69 = math.exp %68 : vector<8x16xf32>
    %cst_34 = arith.constant 1.000000e+00 : f32
    %70 = vector.broadcast %cst_34 : f32 to vector<8x16xf32>
    %71 = arith.addf %70, %69 : vector<8x16xf32>
    %cst_35 = arith.constant 1.000000e+00 : f32
    %72 = vector.broadcast %cst_35 : f32 to vector<8x16xf32>
    %73 = arith.divf %72, %71 : vector<8x16xf32>
    %c0_36 = arith.constant 0 : index
    %c0_37 = arith.constant 0 : index
    %74 = vector.load %arg12[%c0_36, %c0_37] : memref<8x16xf32, #tpu.memory_space<vmem>>, vector<8x16xf32>
    tpu.vector_store %arg12[%c0_36, %c0_37], %73 {strides = array<i32>} : memref<8x16xf32, #tpu.memory_space<vmem>>, vector<8x16xf32>,
    return
  }
  func.func @transform_0(%arg0: i32) -> (i32, i32) {
    %c0_i32 = arith.constant 0 : i32
    %c0_i32_0 = arith.constant 0 : i32
    %c0_i32_1 = arith.constant 0 : i32
    return %c0_i32, %c0_i32_0 : i32, i32
  }
  func.func @transform_1(%arg0: i32) -> (i32, i32) {
    %c0_i32 = arith.constant 0 : i32
    %c0_i32_0 = arith.constant 0 : i32
    %c0_i32_1 = arith.constant 0 : i32
    return %c0_i32, %c0_i32_0 : i32, i32
  }
  func.func @transform_2(%arg0: i32) -> (i32, i32) {
    %c0_i32 = arith.constant 0 : i32
    %c0_i32_0 = arith.constant 0 : i32
    %c0_i32_1 = arith.constant 0 : i32
    return %c0_i32, %c0_i32_0 : i32, i32
  }
  func.func @transform_3(%arg0: i32) -> (i32, i32) {
    %c0_i32 = arith.constant 0 : i32
    %c0_i32_0 = arith.constant 0 : i32
    %c0_i32_1 = arith.constant 0 : i32
    return %c0_i32, %c0_i32_0 : i32, i32
  }
  func.func @transform_4(%arg0: i32) -> (i32, i32) {
    %c0_i32 = arith.constant 0 : i32
    %c0_i32_0 = arith.constant 0 : i32
    %c0_i32_1 = arith.constant 0 : i32
    return %c0_i32, %c0_i32_0 : i32, i32
  }
  func.func @transform_5(%arg0: i32) -> (i32, i32) {
    %c0_i32 = arith.constant 0 : i32
    %c0_i32_0 = arith.constant 0 : i32
    %c0_i32_1 = arith.constant 0 : i32
    return %c0_i32, %c0_i32_0 : i32, i32
  }
  func.func @transform_6(%arg0: i32) -> (i32, i32) {
    %c0_i32 = arith.constant 0 : i32
    %c0_i32_0 = arith.constant 0 : i32
    %c0_i32_1 = arith.constant 0 : i32
    return %c0_i32, %c0_i32_0 : i32, i32
  }
  func.func @transform_7(%arg0: i32) -> (i32, i32) {
    %c0_i32 = arith.constant 0 : i32
    %c0_i32_0 = arith.constant 0 : i32
    %c0_i32_1 = arith.constant 0 : i32
    return %c0_i32, %c0_i32_0 : i32, i32
  }
  func.func @transform_8(%arg0: i32) -> (i32, i32) {
    %c0_i32 = arith.constant 0 : i32
    %c0_i32_0 = arith.constant 0 : i32
    %c0_i32_1 = arith.constant 0 : i32
    return %c0_i32, %c0_i32_0 : i32, i32
  }
  func.func @transform_9(%arg0: i32) -> (i32, i32) {
    %c0_i32 = arith.constant 0 : i32
    %c0_i32_0 = arith.constant 0 : i32
    %c0_i32_1 = arith.constant 0 : i32
    return %c0_i32, %c0_i32_0 : i32, i32
  }
  func.func @transform_10(%arg0: i32) -> (i32, i32) {
    %c0_i32 = arith.constant 0 : i32
    %c0_i32_0 = arith.constant 0 : i32
    %c0_i32_1 = arith.constant 0 : i32
    return %c0_i32, %c0_i32_0 : i32, i32
  }
  func.func @transform_11(%arg0: i32) -> (i32, i32) {
    %c0_i32 = arith.constant 0 : i32
    %c0_i32_0 = arith.constant 0 : i32
    %c0_i32_1 = arith.constant 0 : i32
    return %c0_i32, %c0_i32_0 : i32, i32
  }
}

</mosaic_0001>

<bundles_post_ra>
// kernel: generator_forward.1
= control target key start
LH: loop header
LB: loop body
LE: loop exit
PB: predicated region body
PF: predicated region fallthrough
CT: control target
= control target key end

     0   :  { %v676_v3 = vmov 0   ;;  %v677_v4 = vmov 0.0|0.0   ;;  %s851_s0 = inlined_call_operand.vmem [shape: s32[8,1], index: 0, kind: input, shape index: {}]   ;;  %s852_s1 = inlined_call_operand.vmem [shape: f32[8,16], index: 1, kind: input, shape index: {}]   ;;  %s853_s2 = inlined_call_operand.vmem [shape: f32[8,64], index: 2, kind: input, shape index: {}]   ;;  %s854_s3 = inlined_call_operand.vmem [shape: f32[16,64], index: 3, kind: input, shape index: {}]   ;;  %s855_s4 = inlined_call_operand.vmem [shape: f32[1,64], index: 4, kind: input, shape index: {}]   ;;  %s856_s5 = inlined_call_operand.vmem [shape: f32[64,32], index: 5, kind: input, shape index: {}]   ;;  %s857_s6 = inlined_call_operand.vmem [shape: f32[1,32], index: 6, kind: input, shape index: {}]   ;;  %s858_s7 = inlined_call_operand.vmem [shape: f32[1,32], index: 7, kind: input, shape index: {}]   ;;  %s859_s8 = inlined_call_operand.vmem [shape: f32[1,32], index: 8, kind: input, shape index: {}]   ;;  %s860_s9 = inlined_call_operand.vmem [shape: f32[32,16], index: 9, kind: input, shape index: {}]   ;;  %s861_s10 = inlined_call_operand.vmem [shape: f32[1,16], index: 10, kind: input, shape index: {}]   ;;  %s862_s11 = inlined_call_operand.hbm [shape: f32[8,16], index: 11, kind: output, shape index: {}]  }
   0x1   :  { %v39_v0 = vld [vmem:[%s851_s0] sm:$0xff]  ;;  %v51_v2 = vld [vmem:[%s854_s3 + $0x8] sm:$0xff]  ;;  %645 = vset.pattern.permute.xlu0 %v676_v3  ;;  %616 = vmatprep.subr.bf16.mxu0 %v677_v4 }
   0x2   :  { %v50_v1 = vld [vmem:[%s854_s3] sm:$0xff] }
   0x3   :  { %v617_v5 = vpack.c.bf16 %v51_v2, %v50_v1 }
   0x4   :  { %16 = vsyncpa [#allocation3], 0  ;;  %43 = vperm.xlu0 %645, %v39_v0   ;;  %vm678_vm0 = vmmov 0   ;;  %v679_v6 = vmov 0.0   ;;  %v48_v7 = vld [vmem:[%s853_s2] sm:$0xff]  ;;  %vm52_vm1 = vcmask 130048   ;;  %v40_v9 = vlaneseq }
   0x5   :  { %573 = vmatprep.mubr.msk.f32.mxu0 %vm678_vm0, %v679_v6  ;;  %618 = vmatpush3.bf16.msra.mxu0 %v617_v5  ;;  %v49_v8 = vld [vmem:[%s852_s1] sm:$0xff]  ;;  %v212_v12 = vld [vmem:[%s856_s5 + $0x8] sm:$0xff]  ;;  %vm126_vm2 = vcmask 64512   ;;  %v213_v15 = vld [vmem:[%s856_s5 + $0x10] sm:$0xff]  ;;  %vm226_vm5 = vcmask 523264   ;;  %vm308_vm7 = vcmask 261120  }
   0x6   :  { %576 = vmatprep.subr.mxu1 %v679_v6  ;;  %578 = vmatprep.mubr.msk.f32.mxu1 %vm678_vm0, %v679_v6  ;;  %v41_v10 = vand.u32 127, %v40_v9  ;;  %v211_v11 = vld [vmem:[%s856_s5] sm:$0xff]  ;;  %v214_v16 = vld [vmem:[%s856_s5 + $0x18] sm:$0xff]  ;;  %v216_v20 = vld [vmem:[%s856_s5 + $0x28] sm:$0xff]  ;;  %v681_v50 = vmov 1966171168  }
   0x7   :  { %577 = vmatpush3.msra.mxu1 %v48_v7  ;;  %600 = vmatprep.subr.mxu0 %v679_v6  ;;  %v620_v14 = vpack.c.bf16 %v212_v12, %v211_v11  ;;  %v623_v18 = vpack.c.bf16 %v214_v16, %v213_v15  ;;  %v215_v19 = vld [vmem:[%s856_s5 + $0x20] sm:$0xff]  ;;  %v217_v23 = vld [vmem:[%s856_s5 + $0x30] sm:$0xff]  ;;  %v218_v24 = vld [vmem:[%s856_s5 + $0x38] sm:$0xff]  ;;  %s680_s5 = smov 32   ;;  %v402_v51 = vunpack.c.l.s4 %v681_v50  ;;  %v405_v52 = vshrl.u32 %v40_v9, 7  ;;  %s682_s26 = smov 96  }
   0x8   :  { %619 = vmatprep.subr.bf16.mxu1 %v677_v4  ;;  %574 = vmatmul.mubr.msk.f32.vlgmr.msra.gmra.mrb[0].mxu0 %vm52_vm1, %v49_v8  ;;  %v626_v21 = vpack.c.bf16 %v216_v20, %v215_v19  ;;  %v629_v26 = vpack.c.bf16 %v218_v24, %v217_v23  ;;  %v541_v28 = vld [vmem:[%s855_s4] ss:$0 sm:$0xff]  ;;  %vm300_vm6 = vcmp.lt.s32.totalorder %v41_v10, 8  ;;  %v386_v55 = vld [vmem:[%s860_s9 + $0x8] sm:$0xff]  ;;  %v387_v58 = vld [vmem:[%s860_s9 + $0x10] sm:$0xff] }
   0x9   :  { %602 = vmatprep.mubr.msk.f32.mxu0 %vm678_vm0, %v679_v6  ;;  %v542_v34 = vld [vmem:[%s857_s6] ss:$0 sm:$0xff]  ;;  %v544_v39 = vsel %vm300_vm6, 1.0, %v679_v6  ;;  %v403_v53 = vunpack.c.0.s8 %v402_v51  ;;  %v388_v59 = vld [vmem:[%s860_s9 + $0x18] sm:$0xff]  ;;  %v424_v1 = vsub.s32 0, %v405_v52 }
   0xa   :  { %v385_v54 = vld [vmem:[%s860_s9] sm:$0xff]  ;;  %v635_v61 = vpack.c.bf16 %v388_v59, %v387_v58 }
   0xb   :  { %v632_v56 = vpack.c.bf16 %v386_v55, %v385_v54  ;;  %v406_v57 = vsub.s32 %v403_v53, %v405_v52  ;;  %v383_v0 = vld [vmem:[%s858_s7] sm:$0x1] }
  0x83   :  { %v44_v13 = vpop.permute.xlu0 %43 }
  0x84   :  { %vm45_vm3 = vcmp.eq.s32.totalorder %v44_v13, %v41_v10  ;;  %v546_v13 = vld [vmem:[%s861_s10] ss:$0 sm:$0xff] }
  0x85   :  { %v538_v17 = vsel %vm45_vm3, 1.0, %v679_v6 }
  0x86   :  { %579 = vmatmul.mubr.msk.f32.vlgmr.msra.gmra.mrb[0].mxu1 %vm126_vm2, %v538_v17 }
  0x87   :  { %621 = vmatpush3.bf16.msra.mxu1 %v620_v14  ;;  %597 = vmatprep.mubr.msk.f32.mxu1 %vm678_vm0, %v679_v6 }
  0x88   :  { %622 = vmatprep.subr.bf16.mxu1 %v677_v4 }
  0x8b   :  { %624 = vmatpush3.bf16.msra.mxu1 %v623_v18 }
  0x8c   :  { %625 = vmatprep.subr.bf16.mxu1 %v677_v4 }
  0x8f   :  { %627 = vmatpush3.bf16.msra.mxu1 %v626_v21 }
  0x90   :  { %628 = vmatprep.subr.bf16.mxu1 %v677_v4 }
  0x93   :  { %630 = vmatpush3.bf16.msra.mxu1 %v629_v26 }
  0xdb   :  { %v122_v22 = vpop.f32.mrb[0].mxu0 }
  0xdc   :  { %v575_v25 = vpop.f32.mrb[1].mxu0 }
 0x159   :  { %v196_v27 = vpop.f32.mrb[0].mxu1 }
 0x15a   :  { %v197_v29 = vadd.f32 %v196_v27, %v122_v22  ;;  %v580_v30 = vpop.f32.mrb[1].mxu1 }
 0x15c   :  { %v207_v31 = vadd.f32 %v541_v28, %v197_v29 }
 0x15e   :  { %vm208_vm4 = vcmp.ge.f32.partialorder %v207_v31, 0.0  ;;  %v209_v32 = vmul.f32 0.2, %v207_v31 }
 0x160   :  { %v210_v33 = vsel %vm208_vm4, %v207_v31, %v209_v32 }
 0x161   :  { %598 = vmatmul.mubr.msk.f32.vlgmr.msra.gmra.mrb[2].mxu1 %vm226_vm5, %v210_v33 }
 0x234   :  { %v296_v35 = vpop.f32.mrb[2].mxu1 }
 0x235   :  { %v297_v36 = vadd.f32 %v542_v34, %v296_v35  ;;  %v599_v37 = vpop.f32.mrb[3].mxu1 }
 0x237   :  { %v303_v38 = vmul.f32 %v297_v36, %v297_v36 }
 0x239   :  { %305 = vrot.lane.b32.xlu0 %v303_v38, %s680_s5 }
 0x2ab   :  { %v306_v40 = vpop.permute.xlu0 %305 }
 0x2ac   :  { %v309_v41 = vsel %vm308_vm7, %v297_v36, %v306_v40 }
 0x2ad   :  { %601 = vmatpush3.msra.mxu0 %v309_v41 }
 0x2ae   :  { %603 = vmatmul.mubr.msk.f32.vlgmr.msra.gmra.mrb[2].mxu0 %vm126_vm2, %v544_v39  ;;  %631 = vmatprep.subr.bf16.mxu0 %v677_v4 }
 0x2af   :  { %613 = vmatprep.mubr.msk.f32.mxu0 %vm678_vm0, %v679_v6  ;;  %633 = vmatpush3.bf16.msra.mxu0 %v632_v56 }
 0x2b0   :  { %634 = vmatprep.subr.bf16.mxu0 %v677_v4  ;;  %v384_v4 = vld [vmem:[%s859_s8] sm:$0x1]  ;;  %s683_s8 = smov [#allocation2]  }
 0x2b1   :  { %s530_s12 = sshll.u32 %s683_s8, 4  ;;  %s531_s12 = int_to_ptr.vmem [resolvable:$true] %s530_s12 }
 0x2b2   :  { %s652_s13 = scalar_lea.vmem %s531_s12, 128  ;;  %p657_p1 = scmp.lt.s32.totalorder %s531_s12, %s531_s12 }
 0x2b3   :  { %636 = vmatpush3.bf16.msra.mxu0 %v635_v61  ;;  %p653_p0 = scmp.ne.s32.totalorder %s531_s12, %s652_s13  ;;  %p658_p2 = scmp.lt.s32.totalorder %s652_s13, %s652_s13 }
 0x2b5   :  { %p659_p3 = por %p658_p2, %p657_p1 }
 0x2b7   :  { %p660_p4 = pnand %p659_p3, %p653_p0 }
 0x381   :  { %v379_v42 = vpop.f32.mrb[2].mxu0 }
 0x382   :  { %v390_v43 = vmul.f32 0.125, %v379_v42  ;;  %v604_v44 = vpop.f32.mrb[3].mxu0 }
 0x384   :  { %v391_v45 = vmul.f32 %v390_v43, %v390_v43 }
 0x386   :  { %393 = vrot.lane.b32.xlu1 %v391_v45, %s680_s5 }
 0x3f8   :  { %v394_v46 = vpop.permute.xlu1 %393 }
 0x3f9   :  { %v396_v47 = vsub.f32 %v390_v43, %v394_v46 }
 0x3fb   :  { %v397_v48 = vmax.f32 %v396_v47, 0.0 }
 0x3fd   :  { %v398_v49 = vadd.f32 0.8, %v397_v48 }
 0x3ff   :  { %646 = vrsqrt.f32 %v398_v49 }
 0x409   :  { %v647_v60 = vpop.eup %646 }
 0x40a   :  { %v407_v62 = vrot.slane %v647_v60, %v406_v57 }
 0x40c   :  { %v414_v63 = vrot.slane %v407_v62, %v406_v57 }
 0x40e   :  { %415 = vrot.lane.b32.xlu1 %v414_v63, %s682_s26 }
 0x480   :  { %v416_v2 = vpop.permute.xlu1 %415 }
 0x481   :  { %v418_v3 = vmul.f32 %v416_v2, %v383_v0 }
 0x483   :  { %v419_v5 = vmul.f32 %v418_v3, %v390_v43  ;;  %v425_v6 = vrot.slane %v418_v3, %v424_v1 }
 0x485   :  { %v420_v7 = vsub.f32 %v384_v4, %v419_v5  ;;  %v427_v8 = vmul.f32 %v425_v6, %v297_v36 }
 0x487   :  { %v432_v9 = vrot.slane %v420_v7, %v424_v1 }
 0x489   :  { %v434_v10 = vadd.f32 %v432_v9, %v427_v8 }
 0x48b   :  { %vm435_vm8 = vcmp.ge.f32.partialorder %v434_v10, 0.0  ;;  %v436_v11 = vmul.f32 0.2, %v434_v10 }
 0x48d   :  { %v437_v12 = vsel %vm435_vm8, %v434_v10, %v436_v11 }
 0x48e   :  { %614 = vmatmul.mubr.msk.f32.vlgmr.msra.gmra.mrb[4].mxu0 %vm308_vm7, %v437_v12 }
 0x561   :  { %v513_v14 = vpop.f32.mrb[4].mxu0 }
 0x562   :  { %v514_v15 = vadd.f32 %v546_v13, %v513_v14  ;;  %v615_v16 = vpop.f32.mrb[5].mxu0 }
 0x564   :  { %v517_v17 = vsub.f32 0.0, %v514_v15 }
 0x566   :  { %v518_v18 = vmul.f32 1.442695, %v517_v17 }
 0x568   :  { %648 = vpow2.f32 %v518_v18 }
 0x572   :  { %v649_v19 = vpop.eup %648 }
 0x573   :  { %v520_v20 = vadd.f32 1.0, %v649_v19 }
 0x575   :  { %650 = vrcp.f32 %v520_v20 }
 0x57f   :  { %v651_v21 = vpop.eup %650 }
 0x580   :  { %523 = vst.msk [vmem:[#allocation2] sm:$0xff] %vm52_vm1, %v651_v21 }
 0x581   :  { %663 = shalt.err (!%p660_p4)
}
 0x582   :  { %s664_s15 = scalar_lea.hbm %s862_s11, 128 }
 0x583   :  { %p665_p5 = scmp.ne.s32.totalorder %s862_s11, %s664_s15  ;;  %p668_p6 = scmp.lt.u32.totalorder %s664_s15, %s862_s11 }
 0x585   :  { %p670_p7 = pnand %p668_p6, %p665_p5 }
 0x587   :  { %673 = shalt.err (!%p670_p7)
}
 0x588   :  { %533 = dma.vmem_to_hbm [thread:$0]  %s531_s12, 128, %s862_s11, [#allocation3]  }
 0x589   :  { %674 = dma.done.wait [#allocation3], 128  }
 0x58a   :  { %675 = vsyncadd [#allocation3], 4294967168 }
 0x58b   :  { %537 = vsyncpa [#allocation3], 1 }

</bundles_post_ra>
